<compile_context>
chip_gen: v7x
topology: tpu7x:2x2x1
jax: 0.10.0
libtpu: 0.0.40
codegen_flags: <defaults>
</compile_context>

<pallas_src>
import functools

import jax
import jax.numpy as jnp
from jax.experimental import pallas as pl
from jax.experimental.pallas import tpu as pltpu

# Single grid point (no tiling) up to this many batch rows.
_SINGLE_BLOCK_MAX_B = 16384
# Cap on rows per tile: keeps double-buffered VMEM footprint ~<=10 MiB everywhere.
_MAX_TILE_ROWS = 32768


def _round_up(x, m):
    return ((x + m - 1) // m) * m


def _mlp_kernel_t(xt_ref, w1_ref, b1_ref, w2_ref, b2_ref, ot_ref):
    """Feature-major fused MLP: lane dim of xt/ot is the batch tile (lane-dense).

    xt: (N_STATES, TB)   w1: (N_HIDDEN, N_STATES)   b1: (N_HIDDEN, 1)
    w2: (N_ACTIONS, N_HIDDEN)   b2: (N_ACTIONS, 1)  ot: (N_ACTIONS, TB)
    """
    h = jnp.dot(w1_ref[...], xt_ref[...], preferred_element_type=jnp.float32)
    h = jnp.maximum(h + b1_ref[...], 0.0)                       # bias bcast over lanes, ReLU
    o = jnp.dot(w2_ref[...], h, preferred_element_type=jnp.float32)
    ot_ref[...] = (o + b2_ref[...]).astype(ot_ref.dtype)


def prepare_params(w1, b1, w2, b2):
    """One-time conversion from PyTorch layout to kernel layout.

    PyTorch nn.Linear stores weight as (out_features, in_features) -- exactly what the
    feature-major kernel wants, so weights pass through untouched.  Biases become
    (out, 1) columns so they broadcast along the lane/batch dim with no per-call reshape.
    """
    return (
        jnp.asarray(w1, jnp.float32),                 # (N_HIDDEN, N_STATES)
        jnp.asarray(b1, jnp.float32).reshape(-1, 1),  # (N_HIDDEN, 1)
        jnp.asarray(w2, jnp.float32),                 # (N_ACTIONS, N_HIDDEN)
        jnp.asarray(b2, jnp.float32).reshape(-1, 1),  # (N_ACTIONS, 1)
    )


def _select_block_b(B, block_b):
    """Static (trace-time) tile selection obeying the (8,128) lane rule:
    block_b is either a multiple of 128 or equal to B."""
    if block_b is None:
        if B <= _SINGLE_BLOCK_MAX_B:
            return B                                   # one block: zero grid overhead
        n_blocks = max(2, -(-B // _MAX_TILE_ROWS))     # >=2 blocks (v7x megacore), big tiles
        return min(B, _round_up(-(-B // n_blocks), 128))
    if block_b >= B:
        return B
    return min(B, _round_up(block_b, 128))             # clamp user tile to a legal size


@functools.partial(jax.jit, static_argnames=("block_b",))
def net_forward_pallas(x, w1_p, b1_p, w2_p, b2_p, block_b=None):
    """Pallas forward pass of Net.

    Args:
      x:     (B, N_STATES) float32.
      w1_p:  (N_HIDDEN, N_STATES) float32   -- from prepare_params (PyTorch layout).
      b1_p:  (N_HIDDEN, 1) float32.
      w2_p:  (N_ACTIONS, N_HIDDEN) float32.
      b2_p:  (N_ACTIONS, 1) float32.
      block_b: optional static batch tile (rows); None -> auto.
    Returns:
      (B, N_ACTIONS) float32 action values.
    """
    B, n_states = x.shape
    n_hidden = w1_p.shape[0]
    n_actions = w2_p.shape[0]

    block_b = _select_block_b(B, block_b)
    grid = (pl.cdiv(B, block_b),)

    # One-time layout plumbing (fused by XLA under this jit): batch goes to lanes.
    xt = x.T                                            # (N_STATES, B)

    flops = 2 * B * (n_states * n_hidden + n_hidden * n_actions)
    bytes_accessed = 4 * (
        B * (n_states + n_actions)                      # activation streams
        + n_states * n_hidden + n_hidden                # fc1 params
        + n_hidden * n_actions + n_actions              # out params
    )

    ot = pl.pallas_call(
        _mlp_kernel_t,
        out_shape=jax.ShapeDtypeStruct((n_actions, B), jnp.float32),
        grid=grid,
        in_specs=[
            pl.BlockSpec((n_states, block_b), lambda i: (0, i)),    # x^T: tiled over batch (lanes)
            pl.BlockSpec((n_hidden, n_states), lambda i: (0, 0)),   # W1: resident
            pl.BlockSpec((n_hidden, 1), lambda i: (0, 0)),          # b1: resident
            pl.BlockSpec((n_actions, n_hidden), lambda i: (0, 0)),  # W2: resident
            pl.BlockSpec((n_actions, 1), lambda i: (0, 0)),         # b2: resident
        ],
        out_specs=pl.BlockSpec((n_actions, block_b), lambda i: (0, i)),  # lane-dense output
        compiler_params=pltpu.CompilerParams(
            # Batch axis is embarrassingly parallel -> shards across the 2 TCs on v7x;
            # harmless (grid is usually 1 anyway) on 1-TC v5e/v6e.
            dimension_semantics=("parallel",),
        ),
        cost_estimate=pl.CostEstimate(
            flops=flops, transcendentals=0, bytes_accessed=bytes_accessed),
    )(xt, w1_p, b1_p, w2_p, b2_p)

    return ot.T                                         # back to (B, N_ACTIONS)


@jax.jit
def _net_forward_xla(x, w1_p, b1_p, w2_p, b2_p):
    """Plain fused-XLA path for tiny batches (lower launch overhead than a custom call)."""
    h = jnp.maximum(x @ w1_p.T + b1_p[:, 0], 0.0)
    return h @ w2_p.T + b2_p[:, 0]


def net_forward(x, w1_p, b1_p, w2_p, b2_p, *, block_b=None, pallas_min_batch=256):
    """Dispatching forward pass matching Net.forward semantics (kernel-layout params)."""
    if x.shape[0] < pallas_min_batch:
        return _net_forward_xla(x, w1_p, b1_p, w2_p, b2_p)
    return net_forward_pallas(x, w1_p, b1_p, w2_p, b2_p, block_b=block_b)


def net_forward_ref(x, w1, b1, w2, b2):
    """Pure-JAX reference mirroring the PyTorch forward (PyTorch weight layout)."""
    h = jnp.maximum(x @ w1.T + b1, 0.0)
    return h @ w2.T + b2


def init_params(key, n_states=10, n_actions=5, n_hidden=30):
    """Weights ~ Normal(0, 0.1) as in the module; biases use PyTorch Linear default
    U(-1/sqrt(fan_in), 1/sqrt(fan_in)).  PyTorch layout."""
    k1, k2, k3, k4 = jax.random.split(key, 4)
    w1 = 0.1 * jax.random.normal(k1, (n_hidden, n_states), dtype=jnp.float32)
    w2 = 0.1 * jax.random.normal(k2, (n_actions, n_hidden), dtype=jnp.float32)
    bound1 = 1.0 / jnp.sqrt(n_states)
    bound2 = 1.0 / jnp.sqrt(n_hidden)
    b1 = jax.random.uniform(k3, (n_hidden,), jnp.float32, -bound1, bound1)
    b2 = jax.random.uniform(k4, (n_actions,), jnp.float32, -bound2, bound2)
    return w1, b1, w2, b2


if __name__ == "__main__":
    N_STATES, N_ACTIONS, N_HIDDEN = 10, 5, 30

    key = jax.random.PRNGKey(0)
    kx, kp = jax.random.split(key)
    w1, b1, w2, b2 = init_params(kp, N_STATES, N_ACTIONS, N_HIDDEN)

    # One-time layout preparation (outside the per-step hot path).
    params = prepare_params(w1, b1, w2, b2)
    params = tuple(jax.block_until_ready(p) for p in params)

    # (B=8, single block), (B=300, auto single block), (B=512, explicit 256-row
    # tiles -> grid=(2,), "parallel").  All exercise the lane-dense Pallas path.
    for batch, tile in ((8, None), (300, None), (512, 256)):
        x = jax.random.normal(jax.random.fold_in(kx, batch), (batch, N_STATES),
                              dtype=jnp.float32)
        out = net_forward_pallas(x, *params, block_b=tile)
        out = jax.block_until_ready(out)
        ref = net_forward_ref(x, w1, b1, w2, b2)
        assert out.shape == (batch, N_ACTIONS)
        assert jnp.allclose(out, ref, atol=1e-5, rtol=1e-5), f"mismatch vs reference (B={batch})"

    # Dispatcher sanity check: tiny batch takes the plain XLA path, same numerics.
    x_small = jax.random.normal(jax.random.fold_in(kx, 999), (4, N_STATES), jnp.float32)
    out_small = jax.block_until_ready(net_forward(x_small, *params))
    assert jnp.allclose(out_small, net_forward_ref(x_small, w1, b1, w2, b2),
                        atol=1e-5, rtol=1e-5)

    print("KERNEL_OK")
</pallas_src>

<mosaic_0001>
module attributes {stable_mosaic.version = 11 : i64} {
  func.func @_mlp_kernel_t(%arg0: i32, %arg1: memref<10x8xf32, #tpu.memory_space<vmem>>, %arg2: memref<30x10xf32, #tpu.memory_space<vmem>>, %arg3: memref<30x1xf32, #tpu.memory_space<vmem>>, %arg4: memref<5x30xf32, #tpu.memory_space<vmem>>, %arg5: memref<5x1xf32, #tpu.memory_space<vmem>>, %arg6: memref<5x8xf32, #tpu.memory_space<vmem>>) attributes {dimension_semantics = [#tpu.dimension_semantics<parallel>], iteration_bounds = array<i64: 1>, scalar_prefetch = 0 : i64, scratch_operands = 0 : i64, tpu.core_type = #tpu.core_type<tc>, window_params = [{transform_indices = @transform_0, window_bounds = array<i64: 10, 8>}, {pipeline_mode = #tpu.pipeline_mode<synchronous>, transform_indices = @transform_1, window_bounds = array<i64: 30, 10>}, {pipeline_mode = #tpu.pipeline_mode<synchronous>, transform_indices = @transform_2, window_bounds = array<i64: 30, 1>}, {pipeline_mode = #tpu.pipeline_mode<synchronous>, transform_indices = @transform_3, window_bounds = array<i64: 5, 30>}, {pipeline_mode = #tpu.pipeline_mode<synchronous>, transform_indices = @transform_4, window_bounds = array<i64: 5, 1>}, {transform_indices = @transform_5, window_bounds = array<i64: 5, 8>}]} {
    %c0 = arith.constant 0 : index
    %c0_0 = arith.constant 0 : index
    %0 = vector.load %arg2[%c0, %c0_0] : memref<30x10xf32, #tpu.memory_space<vmem>>, vector<30x10xf32>
    %c0_1 = arith.constant 0 : index
    %c0_2 = arith.constant 0 : index
    %1 = vector.load %arg1[%c0_1, %c0_2] : memref<10x8xf32, #tpu.memory_space<vmem>>, vector<10x8xf32>
    %cst = arith.constant dense<0.000000e+00> : vector<30x8xf32>
    %2 = tpu.matmul %0, %1, %cst {dimension_numbers = #tpu.dot_dimension_numbers<[1], [0], [0], [1], [0, 0, 1, 1], [], []>} : vector<30x10xf32>, vector<10x8xf32>, vector<30x8xf32> -> vector<30x8xf32>
    %c0_3 = arith.constant 0 : index
    %c0_4 = arith.constant 0 : index
    %3 = vector.load %arg3[%c0_3, %c0_4] : memref<30x1xf32, #tpu.memory_space<vmem>>, vector<30x1xf32>
    %4 = vector.broadcast %3 : vector<30x1xf32> to vector<30x8xf32>
    %5 = arith.addf %2, %4 : vector<30x8xf32>
    %cst_5 = arith.constant 0.000000e+00 : f32
    %6 = vector.broadcast %cst_5 : f32 to vector<30x8xf32>
    %7 = arith.maximumf %5, %6 : vector<30x8xf32>
    %c0_6 = arith.constant 0 : index
    %c0_7 = arith.constant 0 : index
    %8 = vector.load %arg4[%c0_6, %c0_7] : memref<5x30xf32, #tpu.memory_space<vmem>>, vector<5x30xf32>
    %cst_8 = arith.constant dense<0.000000e+00> : vector<5x8xf32>
    %9 = tpu.matmul %8, %7, %cst_8 {dimension_numbers = #tpu.dot_dimension_numbers<[1], [0], [0], [1], [0, 0, 1, 1], [], []>} : vector<5x30xf32>, vector<30x8xf32>, vector<5x8xf32> -> vector<5x8xf32>
    %c0_9 = arith.constant 0 : index
    %c0_10 = arith.constant 0 : index
    %10 = vector.load %arg5[%c0_9, %c0_10] : memref<5x1xf32, #tpu.memory_space<vmem>>, vector<5x1xf32>
    %11 = vector.broadcast %10 : vector<5x1xf32> to vector<5x8xf32>
    %12 = arith.addf %9, %11 : vector<5x8xf32>
    %c0_11 = arith.constant 0 : index
    %c0_12 = arith.constant 0 : index
    %13 = vector.load %arg6[%c0_11, %c0_12] : memref<5x8xf32, #tpu.memory_space<vmem>>, vector<5x8xf32>
    tpu.vector_store %arg6[%c0_11, %c0_12], %12 {strides = array<i32>} : memref<5x8xf32, #tpu.memory_space<vmem>>, vector<5x8xf32>,
    return
  }
  func.func @transform_0(%arg0: i32) -> (i32, i32) {
    %c0_i32 = arith.constant 0 : i32
    %c0_i32_0 = arith.constant 0 : i32
    return %c0_i32, %arg0 : i32, i32
  }
  func.func @transform_1(%arg0: i32) -> (i32, i32) {
    %c0_i32 = arith.constant 0 : i32
    %c0_i32_0 = arith.constant 0 : i32
    %c0_i32_1 = arith.constant 0 : i32
    return %c0_i32, %c0_i32_0 : i32, i32
  }
  func.func @transform_2(%arg0: i32) -> (i32, i32) {
    %c0_i32 = arith.constant 0 : i32
    %c0_i32_0 = arith.constant 0 : i32
    %c0_i32_1 = arith.constant 0 : i32
    return %c0_i32, %c0_i32_0 : i32, i32
  }
  func.func @transform_3(%arg0: i32) -> (i32, i32) {
    %c0_i32 = arith.constant 0 : i32
    %c0_i32_0 = arith.constant 0 : i32
    %c0_i32_1 = arith.constant 0 : i32
    return %c0_i32, %c0_i32_0 : i32, i32
  }
  func.func @transform_4(%arg0: i32) -> (i32, i32) {
    %c0_i32 = arith.constant 0 : i32
    %c0_i32_0 = arith.constant 0 : i32
    %c0_i32_1 = arith.constant 0 : i32
    return %c0_i32, %c0_i32_0 : i32, i32
  }
  func.func @transform_5(%arg0: i32) -> (i32, i32) {
    %c0_i32 = arith.constant 0 : i32
    %c0_i32_0 = arith.constant 0 : i32
    return %c0_i32, %arg0 : i32, i32
  }
}

</mosaic_0001>

<bundles_post_ra>
// kernel: net_forward_pallas.1
= control target key start
LH: loop header
LB: loop body
LE: loop exit
PB: predicated region body
PF: predicated region fallthrough
CT: control target
= control target key end

     0   :  { %vm63_vm0 = vcmask 1041408   ;;  %vm50_vm1 = vcmask 80896   ;;  %vm306_vm2 = vmmov 1   ;;  %v307_v4 = vmov 0   ;;  %s386_s0 = inlined_call_operand.vmem [shape: f32[10,8], index: 0, kind: input, shape index: {}]   ;;  %s387_s1 = inlined_call_operand.vmem [shape: f32[30,10], index: 1, kind: input, shape index: {}]   ;;  %s388_s2 = inlined_call_operand.vmem [shape: f32[30,1], index: 2, kind: input, shape index: {}]   ;;  %s389_s4 = inlined_call_operand.vmem [shape: f32[5,1], index: 4, kind: input, shape index: {}]   ;;  %s390_s3 = inlined_call_operand.vmem [shape: f32[5,30], index: 3, kind: input, shape index: {}]   ;;  %s391_s5 = inlined_call_operand.vmem [shape: f32[5,8], index: 5, kind: output, shape index: {}]  }
   0x1   :  { %v24_v0 = vld [vmem:[%s386_s0] sm:$0xff]  ;;  %v25_v1 = vld [vmem:[%s386_s0 + $0x8] sm:$0x3]  ;;  %vm287_vm3 = vmpackc.low %vm63_vm0, %vm306_vm2  ;;  %304 = vset.pattern.permute.xlu0 %v307_v4  ;;  %305 = vset.pattern.permute.xlu1 %v307_v4  ;;  %v308_v13 = vmov 0.0|0.0   ;;  %vm309_vm4 = vmmov 0   ;;  %v310_v14 = vmov 0.0  }
   0x2   :  { %v286_v2 = vpack.c.bf16 %v25_v1, %v24_v0  ;;  %v20_v3 = vld [vmem:[%s387_s1] sm:$0xff]  ;;  %v28_v6 = vld [vmem:[%s388_s2 + $0x10] sm:$0xff]  ;;  %v21_v7 = vld [vmem:[%s387_s1 + $0x8] sm:$0xff]  ;;  %292 = vmatprep.subr.bf16.mxu1 %v308_v13  ;;  %283 = vmatprep.mubr.msk.f32.mxu1 %vm309_vm4, %v310_v14  ;;  %vm167_vm5 = vcmask 1045504   ;;  %vm163_vm7 = vcmask 244736   ;;  %vm241_vm8 = vcmask 61440  }
   0x3   :  { %269 = vmatprep.mubr.msk.f32.mxu0 %vm50_vm1, %v20_v3  ;;  %v26_v5 = vld [vmem:[%s388_s2] sm:$0xff]  ;;  %v27_v8 = vld [vmem:[%s388_s2 + $0x8] sm:$0xff]  ;;  %42 = vperm.xlu1 %305, %v28_v6   ;;  %v22_v9 = vld [vmem:[%s387_s1 + $0x10] sm:$0xff] }
   0x4   :  { %288 = vmatprep.subr.msk.bf16.mxu0 %vm287_vm3, %v286_v2  ;;  %32 = vperm.xlu0 %304, %v26_v5   ;;  %v29_v10 = vld [vmem:[%s388_s2 + $0x18] sm:$0x3f]  ;;  %v157_v12 = vld [vmem:[%s389_s4] sm:$0x1f]  ;;  %vm297_vm6 = vmpackc.low %vm167_vm5, %vm306_vm2 }
   0x5   :  { %291 = vmatpush3.bf16.msk.msra.mxu0 %vm287_vm3, %v286_v2  ;;  %v23_v11 = vld [vmem:[%s387_s1 + $0x18] sm:$0x3f]  ;;  %v156_v33 = vld [vmem:[%s390_s3] sm:$0x1f] }
   0x7   :  { %47 = vperm.xlu1 %305, %v29_v10  }
   0x8   :  { %270 = vmatmul.mubr.msk.f32.vlgmr.msra.gmra.mrb[0].mxu0 %vm50_vm1, %v21_v7  ;;  %37 = vperm.xlu0 %304, %v27_v8  }
   0x9   :  { %272 = vmatprep.mubr.msk.f32.mxu0 %vm50_vm1, %v22_v9 }
   0xc   :  { %273 = vmatmul.mubr.msk.f32.gmra.mrb[2].mxu0 %vm50_vm1, %v23_v11  ;;  %160 = vperm.xlu0 %304, %v157_v12  }
  0x82   :  { %v43_v16 = vpop.permute.xlu1 %42 }
  0x83   :  { %v33_v15 = vpop.permute.xlu0 %32 }
  0x86   :  { %v48_v23 = vpop.permute.xlu1 %47 }
  0x87   :  { %v38_v17 = vpop.permute.xlu0 %37 }
  0x8b   :  { %v161_v34 = vpop.permute.xlu0 %160 }
  0xdb   :  { %v271_v18 = vpop.f32.mrb[0].mxu0 }
  0xdc   :  { %v139_v19 = vadd.f32 %v271_v18, %v38_v17  ;;  %v133_v20 = vpop.f32.mrb[1].mxu0 }
  0xdd   :  { %v134_v21 = vadd.f32 %v133_v20, %v33_v15 }
  0xde   :  { %v153_v22 = vmax.f32 %v139_v19, 0.0 }
  0xdf   :  { %v152_v24 = vmax.f32 %v134_v21, 0.0  ;;  %v274_v25 = vpop.f32.mrb[2].mxu0 }
  0xe0   :  { %v149_v26 = vadd.f32 %v274_v25, %v48_v23  ;;  %v143_v27 = vpop.f32.mrb[3].mxu0 }
  0xe1   :  { %v144_v28 = vadd.f32 %v143_v27, %v43_v16  ;;  %v293_v29 = vpack.c.bf16 %v153_v22, %v152_v24 }
  0xe2   :  { %v155_v30 = vmax.f32 %v149_v26, 0.0 }
  0xe3   :  { %v154_v31 = vmax.f32 %v144_v28, 0.0  ;;  %294 = vmatpush3.bf16.msra.mxu1 %v293_v29 }
  0xe4   :  { %295 = vmatprep.subr.bf16.mxu1 %v308_v13 }
  0xe5   :  { %v296_v32 = vpack.c.bf16 %v155_v30, %v154_v31 }
  0xe7   :  { %298 = vmatpush3.bf16.msk.msra.mxu1 %vm297_vm6, %v296_v32 }
  0xea   :  { %284 = vmatmul.mubr.msk.f32.vlgmr.msra.gmra.mrb[0].mxu1 %vm163_vm7, %v156_v33 }
 0x1bd   :  { %v237_v35 = vpop.f32.mrb[0].mxu1 }
 0x1be   :  { %v238_v36 = vadd.f32 %v237_v35, %v161_v34  ;;  %v285_v37 = vpop.f32.mrb[1].mxu1 }
 0x1c0   :  { %242 = vst.msk [vmem:[%s391_s5] sm:$0x1f] %vm241_vm8, %v238_v36 }

</bundles_post_ra>
